<compile_context>
chip_gen: v7x
topology: tpu7x:2x2x1
jax: 0.10.0
libtpu: 0.0.40
codegen_flags: <defaults>
</compile_context>

<pallas_src>
import math
from functools import partial

import jax
import jax.numpy as jnp
from jax import lax
from jax.experimental import pallas as pl
from jax.experimental.pallas import tpu as pltpu


def _round_up(n, m):
    return ((n + m - 1) // m) * m


def _flow_logprob_kernel(x_ref, y_ref, w_ref, b_ref, e_ref, out_ref, *,
                         num_transforms, features, padded_features):
    K, D, Dp = num_transforms, features, padded_features

    # --- hyper-net: one fused MXU matmul, transposed (feature-major) output -
    # params_t[p, b] = sum_c W[p, c] * y[b, c]   (bf16 operands, f32 acc).
    # This is the standard "A @ B^T" contraction (same as q @ k^T in flash
    # attention), so it lowers cleanly on the MXU.
    y_bf = y_ref[...].astype(jnp.bfloat16)                      # cast in-kernel
    params_t = lax.dot_general(
        w_ref[...], y_bf,
        dimension_numbers=(((1,), (1,)), ((), ())),
        preferred_element_type=jnp.float32)                     # (2*K*Dp, TB)
    # Single bias add, lane-broadcast of a (2*K*Dp, 1) column; tiny now that
    # the slab is densely packed (see header for why it is not matmul-folded).
    params_t = params_t + b_ref[...]

    # Feature rows are on the sublane axis -> per-k slices are sublane-aligned
    # (Dp is a multiple of 8) and the tanh/exp slabs are lane-dense, so the
    # EUP only sees the 2*K*Dp*TB elements that are actually needed.
    shift_all = params_t[: K * Dp, :]                           # (K*Dp, TB)
    ls_all = jnp.tanh(params_t[K * Dp:, :])                     # (K*Dp, TB)
    scale_all = jnp.exp(ls_all)

    # Transpose the x tile to (Dp, TB) on the (idle) MXU with a padded
    # identity:  z0 = E (Dp, D) @ x^T.  Exact in f32; avoids any wrapper-side
    # feature padding / transposition of x and any XLU transpose lowering.
    z = lax.dot_general(
        e_ref[...], x_ref[...],
        dimension_numbers=(((1,), (1,)), ((), ())),
        preferred_element_type=jnp.float32)                     # (Dp, TB)

    # Sequential affine chain z <- z * scale_k + shift_k; sublane-aligned
    # slices, unrolled at trace time (K is small).
    for k in range(K):
        lo = k * Dp
        z = z * scale_all[lo:lo + Dp, :] + shift_all[lo:lo + Dp, :]

    # Padded feature rows carry shift=0, log_scale=tanh(0)=0 and z=0, so the
    # unmasked sublane reductions are exact.  Result is already a lane-dense
    # (1, TB) row -> unmasked vector store.
    ladj = jnp.sum(ls_all, axis=0, keepdims=True)               # (1, TB)
    base = (-0.5 * jnp.sum(z * z, axis=0, keepdims=True)
            - 0.5 * D * math.log(2.0 * math.pi))
    out_ref[...] = (base + ladj).reshape(1, 1, -1).astype(out_ref.dtype)


def prepare_flow_params(weights, biases):
    """One-time repack of the K hyper-net (W, b) into the fused kernel layout.

    Call once (outside the per-step hot path) and reuse the result across
    calls; this hoists the repack + bf16 cast the perf review flagged.
    Layout (rows of the fused weight):
        [shift_0 | shift_1 | ... | shift_{K-1} | ls_0 | ... | ls_{K-1}],
    each block zero-padded from D to Dp = round_up(D, 8) rows (sublane
    alignment only) so pad rows give shift = 0, log_scale = tanh(0) = 0.
    """
    K, C, twoD = weights.shape
    D = twoD // 2
    assert biases.shape == (K, twoD)
    Dp = _round_up(D, 8)
    NW = 2 * K * Dp

    w = jnp.zeros((NW, C), jnp.float32)
    b = jnp.zeros((NW, 1), jnp.float32)
    for k in range(K):
        w = w.at[k * Dp:k * Dp + D, :].set(weights[k, :, :D].T.astype(jnp.float32))
        w = w.at[(K + k) * Dp:(K + k) * Dp + D, :].set(weights[k, :, D:].T.astype(jnp.float32))
        b = b.at[k * Dp:k * Dp + D, 0].set(biases[k, :D].astype(jnp.float32))
        b = b.at[(K + k) * Dp:(K + k) * Dp + D, 0].set(biases[k, D:].astype(jnp.float32))
    w = w.astype(jnp.bfloat16)            # bf16 MXU operand, f32 accumulation

    # Padded identity used in-kernel to transpose the x tile on the MXU.
    e = jnp.zeros((Dp, D), jnp.float32).at[:D, :D].set(jnp.eye(D, dtype=jnp.float32))
    return w, b, e, K, D, Dp


def flow_log_prob(x, y, packed, *, tile_b=None):
    """log p(x | y) under the conditional affine-transform flow."""
    w, b, e, K, D, Dp = packed
    B, Dx = x.shape
    By, C = y.shape
    assert Dx == D and By == B
    assert w.shape == (2 * K * Dp, C)

    if tile_b is None:
        # Few, fat grid steps: per-step overhead (~0.35us) dominates small
        # tiles, and the per-tile VMEM footprint is only ~1.4 KB per batch row
        # (well under v7x's 64 MiB and the 32 MiB scoped limit even at 4096).
        # Keep >=2 steps when B allows so dimension_semantics=("parallel",)
        # can shard the batch across v7x's two TensorCores.
        tile_b = min(4096, max(128, _round_up(B, 128) // 2))
    tile_b = max(128, _round_up(tile_b, 128))
    Bp = _round_up(B, tile_b)
    n_tiles = Bp // tile_b

    # Only the batch dim is (possibly) padded; x / y keep their true feature
    # widths and dtypes (no per-call feature padding or bf16 copies).
    if Bp != B:
        x_in = jnp.zeros((Bp, D), jnp.float32).at[:B].set(x.astype(jnp.float32))
        y_in = jnp.zeros((Bp, C), jnp.float32).at[:B].set(y.astype(jnp.float32))
    else:
        x_in = x.astype(jnp.float32)
        y_in = y.astype(jnp.float32)

    kernel = partial(_flow_logprob_kernel,
                     num_transforms=K, features=D, padded_features=Dp)

    out = pl.pallas_call(
        kernel,
        out_shape=jax.ShapeDtypeStruct((n_tiles, 1, tile_b), jnp.float32),
        grid_spec=pltpu.PrefetchScalarGridSpec(
            num_scalar_prefetch=0,
            grid=(n_tiles,),
            in_specs=[
                pl.BlockSpec((tile_b, D), lambda i: (i, 0)),        # x tile
                pl.BlockSpec((tile_b, C), lambda i: (i, 0)),        # y tile
                pl.BlockSpec((2 * K * Dp, C), lambda i: (0, 0)),    # resident W^T
                pl.BlockSpec((2 * K * Dp, 1), lambda i: (0, 0)),    # resident bias
                pl.BlockSpec((Dp, D), lambda i: (0, 0)),            # resident E
            ],
            out_specs=pl.BlockSpec((1, 1, tile_b), lambda i: (i, 0, 0)),
        ),
        compiler_params=pltpu.CompilerParams(
            dimension_semantics=("parallel",),        # shards over v7x's 2 TCs
            vmem_limit_bytes=32 * 1024 * 1024,        # >>footprint; ok on v5e..v7x
        ),
    )(x_in, y_in, w, b, e)

    return out.reshape(-1)[:B][:, None]


def _reference_log_prob(x, y, weights, biases):
    """Pure-JAX reference with identical semantics (bf16 MXU, f32 elsewhere)."""
    D = x.shape[-1]
    y_bf = y.astype(jnp.bfloat16)
    z = x.astype(jnp.float32)
    ladj = jnp.zeros((x.shape[0],), jnp.float32)
    for k in range(weights.shape[0]):
        params = jnp.dot(y_bf, weights[k].astype(jnp.bfloat16),
                         preferred_element_type=jnp.float32) + biases[k].astype(jnp.float32)
        shift, log_scale = params[:, :D], jnp.tanh(params[:, D:])
        z = z * jnp.exp(log_scale) + shift
        ladj = ladj + jnp.sum(log_scale, axis=-1)
    base = -0.5 * jnp.sum(z * z, axis=-1) - 0.5 * D * math.log(2.0 * math.pi)
    return (base + ladj)[:, None]


if __name__ == "__main__":
    key = jax.random.PRNGKey(0)
    k_x, k_y, k_w, k_b = jax.random.split(key, 4)

    B = 8        # batch
    D = 16       # flow features
    C = 32       # context dim
    K = 3        # number of chained affine transforms

    x = jax.random.normal(k_x, (B, D), dtype=jnp.float32)
    y = jax.random.normal(k_y, (B, C), dtype=jnp.float32)

    # Deterministic hyper-network parameters (synthetic init, no checkpoint).
    weights = 0.1 * jax.random.normal(k_w, (K, C, 2 * D), dtype=jnp.float32)
    biases = 0.01 * jax.random.normal(k_b, (K, 2 * D), dtype=jnp.float32)

    # One-time repack (hoisted off the per-call path), then the kernel call.
    packed = prepare_flow_params(weights, biases)
    out = flow_log_prob(x, y, packed)
    out = jax.block_until_ready(out)

    ref = _reference_log_prob(x, y, weights, biases)
    assert out.shape == (B, 1)
    assert jnp.allclose(out, ref, atol=5e-3, rtol=5e-3), (out, ref)

    # TODO(synk): SimpleAffineTransform.forward returns a Distribution/Transform
    # object (AffineTransform); only its apply + log|det J| hot path is a kernel.
    print("KERNEL_OK")
</pallas_src>

<mosaic_0001>
module attributes {stable_mosaic.version = 11 : i64} {
  func.func @_flow_logprob_kernel(%arg0: i32, %arg1: memref<128x16xf32, #tpu.memory_space<vmem>>, %arg2: memref<128x32xf32, #tpu.memory_space<vmem>>, %arg3: memref<96x32xbf16, #tpu.memory_space<vmem>>, %arg4: memref<96x1xf32, #tpu.memory_space<vmem>>, %arg5: memref<16x16xf32, #tpu.memory_space<vmem>>, %arg6: memref<1x1x128xf32, #tpu.memory_space<vmem>>) attributes {dimension_semantics = [#tpu.dimension_semantics<parallel>], iteration_bounds = array<i64: 1>, scalar_prefetch = 0 : i64, scratch_operands = 0 : i64, tpu.core_type = #tpu.core_type<tc>, window_params = [{transform_indices = @transform_0, window_bounds = array<i64: 128, 16>}, {transform_indices = @transform_1, window_bounds = array<i64: 128, 32>}, {pipeline_mode = #tpu.pipeline_mode<synchronous>, transform_indices = @transform_2, window_bounds = array<i64: 96, 32>}, {pipeline_mode = #tpu.pipeline_mode<synchronous>, transform_indices = @transform_3, window_bounds = array<i64: 96, 1>}, {pipeline_mode = #tpu.pipeline_mode<synchronous>, transform_indices = @transform_4, window_bounds = array<i64: 16, 16>}, {transform_indices = @transform_5, window_bounds = array<i64: 1, 1, 128>}]} {
    %c0 = arith.constant 0 : index
    %c0_0 = arith.constant 0 : index
    %0 = vector.load %arg2[%c0, %c0_0] : memref<128x32xf32, #tpu.memory_space<vmem>>, vector<128x32xf32>
    %1 = arith.truncf %0 : vector<128x32xf32> to vector<128x32xbf16>
    %c0_1 = arith.constant 0 : index
    %c0_2 = arith.constant 0 : index
    %2 = vector.load %arg3[%c0_1, %c0_2] : memref<96x32xbf16, #tpu.memory_space<vmem>>, vector<96x32xbf16>
    %cst = arith.constant dense<0.000000e+00> : vector<96x128xf32>
    %3 = tpu.matmul %2, %1, %cst {dimension_numbers = #tpu.dot_dimension_numbers<[1], [1], [0], [0], [0, 0, 1, 0], [], []>} : vector<96x32xbf16>, vector<128x32xbf16>, vector<96x128xf32> -> vector<96x128xf32>
    %c0_3 = arith.constant 0 : index
    %c0_4 = arith.constant 0 : index
    %4 = vector.load %arg4[%c0_3, %c0_4] : memref<96x1xf32, #tpu.memory_space<vmem>>, vector<96x1xf32>
    %5 = vector.broadcast %4 : vector<96x1xf32> to vector<96x128xf32>
    %6 = arith.addf %3, %5 : vector<96x128xf32>
    %7 = vector.extract_strided_slice %6 {offsets = [0, 0], sizes = [48, 128], strides = [1, 1]} : vector<96x128xf32> to vector<48x128xf32>
    %8 = vector.extract_strided_slice %6 {offsets = [48, 0], sizes = [48, 128], strides = [1, 1]} : vector<96x128xf32> to vector<48x128xf32>
    %9 = math.tanh %8 : vector<48x128xf32>
    %10 = math.exp %9 : vector<48x128xf32>
    %c0_5 = arith.constant 0 : index
    %c0_6 = arith.constant 0 : index
    %11 = vector.load %arg5[%c0_5, %c0_6] : memref<16x16xf32, #tpu.memory_space<vmem>>, vector<16x16xf32>
    %c0_7 = arith.constant 0 : index
    %c0_8 = arith.constant 0 : index
    %12 = vector.load %arg1[%c0_7, %c0_8] : memref<128x16xf32, #tpu.memory_space<vmem>>, vector<128x16xf32>
    %cst_9 = arith.constant dense<0.000000e+00> : vector<16x128xf32>
    %13 = tpu.matmul %11, %12, %cst_9 {dimension_numbers = #tpu.dot_dimension_numbers<[1], [1], [0], [0], [0, 0, 1, 0], [], []>} : vector<16x16xf32>, vector<128x16xf32>, vector<16x128xf32> -> vector<16x128xf32>
    %14 = vector.extract_strided_slice %10 {offsets = [0, 0], sizes = [16, 128], strides = [1, 1]} : vector<48x128xf32> to vector<16x128xf32>
    %15 = arith.mulf %13, %14 : vector<16x128xf32>
    %16 = vector.extract_strided_slice %7 {offsets = [0, 0], sizes = [16, 128], strides = [1, 1]} : vector<48x128xf32> to vector<16x128xf32>
    %17 = arith.addf %15, %16 : vector<16x128xf32>
    %18 = vector.extract_strided_slice %10 {offsets = [16, 0], sizes = [16, 128], strides = [1, 1]} : vector<48x128xf32> to vector<16x128xf32>
    %19 = arith.mulf %17, %18 : vector<16x128xf32>
    %20 = vector.extract_strided_slice %7 {offsets = [16, 0], sizes = [16, 128], strides = [1, 1]} : vector<48x128xf32> to vector<16x128xf32>
    %21 = arith.addf %19, %20 : vector<16x128xf32>
    %22 = vector.extract_strided_slice %10 {offsets = [32, 0], sizes = [16, 128], strides = [1, 1]} : vector<48x128xf32> to vector<16x128xf32>
    %23 = arith.mulf %21, %22 : vector<16x128xf32>
    %24 = vector.extract_strided_slice %7 {offsets = [32, 0], sizes = [16, 128], strides = [1, 1]} : vector<48x128xf32> to vector<16x128xf32>
    %25 = arith.addf %23, %24 : vector<16x128xf32>
    %cst_10 = arith.constant dense<0.000000e+00> : vector<128xf32>
    %26 = vector.multi_reduction <add>, %9, %cst_10 [0] : vector<48x128xf32> to vector<128xf32>
    %27 = vector.shape_cast %26 : vector<128xf32> to vector<1x128xf32>
    %28 = arith.mulf %25, %25 : vector<16x128xf32>
    %cst_11 = arith.constant dense<0.000000e+00> : vector<128xf32>
    %29 = vector.multi_reduction <add>, %28, %cst_11 [0] : vector<16x128xf32> to vector<128xf32>
    %30 = vector.shape_cast %29 : vector<128xf32> to vector<1x128xf32>
    %cst_12 = arith.constant -5.000000e-01 : f32
    %31 = vector.broadcast %cst_12 : f32 to vector<1x128xf32>
    %32 = arith.mulf %31, %30 : vector<1x128xf32>
    %cst_13 = arith.constant 14.7030163 : f32
    %33 = vector.broadcast %cst_13 : f32 to vector<1x128xf32>
    %34 = arith.subf %32, %33 : vector<1x128xf32>
    %35 = arith.addf %34, %27 : vector<1x128xf32>
    %36 = vector.shape_cast %35 : vector<1x128xf32> to vector<1x1x128xf32>
    %c0_14 = arith.constant 0 : index
    %c0_15 = arith.constant 0 : index
    %c0_16 = arith.constant 0 : index
    %37 = vector.load %arg6[%c0_14, %c0_15, %c0_16] : memref<1x1x128xf32, #tpu.memory_space<vmem>>, vector<1x1x128xf32>
    tpu.vector_store %arg6[%c0_14, %c0_15, %c0_16], %36 {strides = array<i32>} : memref<1x1x128xf32, #tpu.memory_space<vmem>>, vector<1x1x128xf32>,
    return
  }
  func.func @transform_0(%arg0: i32) -> (i32, i32) {
    %c0_i32 = arith.constant 0 : i32
    %c0_i32_0 = arith.constant 0 : i32
    return %arg0, %c0_i32 : i32, i32
  }
  func.func @transform_1(%arg0: i32) -> (i32, i32) {
    %c0_i32 = arith.constant 0 : i32
    %c0_i32_0 = arith.constant 0 : i32
    return %arg0, %c0_i32 : i32, i32
  }
  func.func @transform_2(%arg0: i32) -> (i32, i32) {
    %c0_i32 = arith.constant 0 : i32
    %c0_i32_0 = arith.constant 0 : i32
    %c0_i32_1 = arith.constant 0 : i32
    return %c0_i32, %c0_i32_0 : i32, i32
  }
  func.func @transform_3(%arg0: i32) -> (i32, i32) {
    %c0_i32 = arith.constant 0 : i32
    %c0_i32_0 = arith.constant 0 : i32
    %c0_i32_1 = arith.constant 0 : i32
    return %c0_i32, %c0_i32_0 : i32, i32
  }
  func.func @transform_4(%arg0: i32) -> (i32, i32) {
    %c0_i32 = arith.constant 0 : i32
    %c0_i32_0 = arith.constant 0 : i32
    %c0_i32_1 = arith.constant 0 : i32
    return %c0_i32, %c0_i32_0 : i32, i32
  }
  func.func @transform_5(%arg0: i32) -> (i32, i32, i32) {
    %c0_i32 = arith.constant 0 : i32
    %c0_i32_0 = arith.constant 0 : i32
    %c0_i32_1 = arith.constant 0 : i32
    return %arg0, %c0_i32, %c0_i32_0 : i32, i32, i32
  }
}

</mosaic_0001>

<bundles_post_ra>
// kernel: tpu_custom_call.1
= control target key start
LH: loop header
LB: loop body
LE: loop exit
PB: predicated region body
PF: predicated region fallthrough
CT: control target
= control target key end

     0   :  { %vm160_vm0 = vcmask 261120   ;;  %vm320_vm1 = vcmask 130048   ;;  %v740_v5 = vmov 0   ;;  %s1014_s0 = inlined_call_operand.vmem [shape: f32[128,16], index: 0, kind: input, shape index: {}]   ;;  %s1015_s1 = inlined_call_operand.vmem [shape: f32[128,32], index: 1, kind: input, shape index: {}]   ;;  %s1016_s2 = inlined_call_operand.vmem [shape: bf16[96,32], index: 2, kind: input, shape index: {}]   ;;  %s1017_s3 = inlined_call_operand.vmem [shape: f32[96,1], index: 3, kind: input, shape index: {}]   ;;  %s1018_s4 = inlined_call_operand.vmem [shape: f32[16,16], index: 4, kind: input, shape index: {}]   ;;  %s1019_s5 = inlined_call_operand.hbm [shape: f32[1,1,128], index: 5, kind: output, shape index: {}]  }
   0x1   :  { %v22_v0 = vld [vmem:[%s1015_s1] sm:$0xff]  ;;  %v23_v1 = vld [vmem:[%s1015_s1 + $0x8] sm:$0xff]  ;;  %v24_v2 = vld [vmem:[%s1015_s1 + $0x10] sm:$0xff]  ;;  %684 = vset.pattern.permute.xlu0 %v740_v5  ;;  %685 = vset.pattern.permute.xlu1 %v740_v5 }
   0x2   :  { %v38_v3 = vpack.c.bf16 %v23_v1, %v22_v0  ;;  %v25_v4 = vld [vmem:[%s1015_s1 + $0x18] sm:$0xff]  ;;  %v304_v8 = vld [vmem:[%s1014_s0] sm:$0xff]  ;;  %v305_v9 = vld [vmem:[%s1014_s0 + $0x8] sm:$0xff] }
   0x3   :  { %v39_v6 = vpack.c.bf16 %v25_v4, %v24_v2  ;;  %v626_v10 = vpack.c.bf16 %v305_v9, %v304_v8  ;;  %vm794_vm2 = vmpackc.low %vm320_vm1, %vm320_vm1  ;;  %v306_v12 = vld [vmem:[%s1014_s0 + $0x10] sm:$0xff]  ;;  %v307_v13 = vld [vmem:[%s1014_s0 + $0x18] sm:$0xff] }
   0x4   :  { %674 = vmatprep.subr.msk.bf16.mxu0 %vm160_vm0, %v38_v3  ;;  %v180_v7 = vsel %vm160_vm0, %v38_v3, 0  ;;  %v26_v14 = vld [vmem:[%s1015_s1 + $0x20] sm:$0xff]  ;;  %v27_v15 = vld [vmem:[%s1015_s1 + $0x28] sm:$0xff]  ;;  %v632_v16 = vpack.c.bf16 %v307_v13, %v306_v12  ;;  %v28_v23 = vld [vmem:[%s1015_s1 + $0x30] sm:$0xff] }
   0x5   :  { %564 = vmatpush3.bf16.xpose.msra.mxu0 %v180_v7  ;;  %628 = vmatprep.subr.msk.bf16.mxu1 %vm794_vm2, %v626_v10  ;;  %v308_v17 = vld [vmem:[%s1014_s0 + $0x20] sm:$0xff]  ;;  %v309_v18 = vld [vmem:[%s1014_s0 + $0x28] sm:$0xff]  ;;  %v183_v19 = vsel %vm160_vm0, %v39_v6, 0  ;;  %v40_v20 = vpack.c.bf16 %v27_v15, %v26_v14  ;;  %v29_v24 = vld [vmem:[%s1015_s1 + $0x38] sm:$0xff] }
   0x6   :  { %675 = vmatprep.subr.msk.bf16.mxu0 %vm160_vm0, %v39_v6  ;;  %631 = vmatpush3.bf16.xpose.msk.msra.mxu1 %vm794_vm2, %v626_v10  ;;  %v686_v21 = vld [vmem:[%s1016_s2] sm:$0xff]   ;;  %v638_v22 = vpack.c.bf16 %v309_v18, %v308_v17  ;;  %v310_v25 = vld [vmem:[%s1014_s0 + $0x30] sm:$0xff]  ;;  %v41_v27 = vpack.c.bf16 %v29_v24, %v28_v23  ;;  %v311_v28 = vld [vmem:[%s1014_s0 + $0x38] sm:$0xff] }
   0x7   :  { %634 = vmatprep.subr.msk.bf16.mxu1 %vm794_vm2, %v632_v16  ;;  %579 = vmatprep.mubr.msk.bf16.mxu0 %vm160_vm0, %v686_v21  ;;  %v186_v26 = vsel %vm160_vm0, %v40_v20, 0  ;;  %v302_v29 = vld [vmem:[%s1018_s4] sm:$0xff]  ;;  %v64_v30 = vld [vmem:[%s1017_s3 + $0x30] sm:$0xff]  ;;  %v65_v32 = vld [vmem:[%s1017_s3 + $0x38] sm:$0xff]  ;;  %v644_v33 = vpack.c.bf16 %v311_v28, %v310_v25 }
   0x8   :  { %623 = vmatprep.mubr.msk.f32.mxu1 %vm320_vm1, %v302_v29  ;;  %102 = vperm.xlu0 %684, %v64_v30   ;;  %v66_v31 = vld [vmem:[%s1017_s3 + $0x40] sm:$0xff]  ;;  %v67_v34 = vld [vmem:[%s1017_s3 + $0x48] sm:$0xff] }
   0x9   :  { %112 = vperm.xlu1 %685, %v66_v31  }
   0xd   :  { %566 = vmatpush3.bf16.xpose.msra.mxu0 %v183_v19 }
   0xe   :  { %676 = vmatprep.subr.msk.bf16.mxu0 %vm160_vm0, %v40_v20  ;;  %637 = vmatpush3.bf16.xpose.msk.msra.mxu1 %vm794_vm2, %v632_v16 }
   0xf   :  { %640 = vmatprep.subr.msk.bf16.mxu1 %vm794_vm2, %v638_v22 }
  0x15   :  { %568 = vmatpush3.bf16.xpose.msra.mxu0 %v186_v26 }
  0x16   :  { %677 = vmatprep.subr.msk.bf16.mxu0 %vm160_vm0, %v41_v27 }
  0x17   :  { %10 = vsyncpa [#allocation3], 0  ;;  %v30_v35 = vld [vmem:[%s1015_s1 + $0x40] sm:$0xff]  ;;  %v31_v36 = vld [vmem:[%s1015_s1 + $0x48] sm:$0xff]  ;;  %107 = vperm.xlu0 %684, %v65_v32   ;;  %643 = vmatpush3.bf16.xpose.msk.msra.mxu1 %vm794_vm2, %v638_v22  ;;  %v189_v39 = vsel %vm160_vm0, %v41_v27, 0 }
  0x18   :  { %117 = vperm.xlu1 %685, %v67_v34   ;;  %v68_v37 = vld [vmem:[%s1017_s3 + $0x50] sm:$0xff]  ;;  %646 = vmatprep.subr.msk.bf16.mxu1 %vm794_vm2, %v644_v33  ;;  %v69_v38 = vld [vmem:[%s1017_s3 + $0x58] sm:$0xff]  ;;  %v42_v40 = vpack.c.bf16 %v31_v36, %v30_v35  ;;  %v312_v41 = vld [vmem:[%s1014_s0 + $0x40] sm:$0xff] }
  0x19   :  { %v313_v42 = vld [vmem:[%s1014_s0 + $0x48] sm:$0xff]  ;;  %v58_v43 = vld [vmem:[%s1017_s3] sm:$0xff]  ;;  %v32_v46 = vld [vmem:[%s1015_s1 + $0x50] sm:$0xff] }
  0x1a   :  { %v650_v44 = vpack.c.bf16 %v313_v42, %v312_v41  ;;  %v59_v45 = vld [vmem:[%s1017_s3 + $0x8] sm:$0xff]  ;;  %v33_v47 = vld [vmem:[%s1015_s1 + $0x58] sm:$0xff]  ;;  %v60_v48 = vld [vmem:[%s1017_s3 + $0x10] sm:$0xff]  ;;  %v192_v50 = vsel %vm160_vm0, %v42_v40, 0 }
  0x1b   :  { %122 = vperm.xlu0 %684, %v68_v37   ;;  %v61_v49 = vld [vmem:[%s1017_s3 + $0x18] sm:$0xff]  ;;  %v43_v51 = vpack.c.bf16 %v33_v47, %v32_v46  ;;  %v314_v52 = vld [vmem:[%s1014_s0 + $0x50] sm:$0xff]  ;;  %v62_v54 = vld [vmem:[%s1017_s3 + $0x20] sm:$0xff] }
  0x1c   :  { %127 = vperm.xlu1 %685, %v69_v38   ;;  %v315_v53 = vld [vmem:[%s1014_s0 + $0x58] sm:$0xff]  ;;  %v63_v56 = vld [vmem:[%s1017_s3 + $0x28] sm:$0xff]  ;;  %v34_v57 = vld [vmem:[%s1015_s1 + $0x60] sm:$0xff] }
  0x1d   :  { %570 = vmatpush3.bf16.xpose.msra.mxu0 %v189_v39  ;;  %v656_v55 = vpack.c.bf16 %v315_v53, %v314_v52  ;;  %v35_v58 = vld [vmem:[%s1015_s1 + $0x68] sm:$0xff]  ;;  %v195_v59 = vsel %vm160_vm0, %v43_v51, 0  ;;  %v316_v61 = vld [vmem:[%s1014_s0 + $0x60] sm:$0xff]  ;;  %v36_v0 = vld [vmem:[%s1015_s1 + $0x70] sm:$0xff] }
  0x1e   :  { %678 = vmatprep.subr.msk.bf16.mxu0 %vm160_vm0, %v42_v40  ;;  %v44_v60 = vpack.c.bf16 %v35_v58, %v34_v57  ;;  %v317_v62 = vld [vmem:[%s1014_s0 + $0x68] sm:$0xff]  ;;  %v37_v1 = vld [vmem:[%s1015_s1 + $0x78] sm:$0xff]  ;;  %v318_v4 = vld [vmem:[%s1014_s0 + $0x70] sm:$0xff] }
  0x1f   :  { %72 = vperm.xlu0 %684, %v58_v43   ;;  %649 = vmatpush3.bf16.xpose.msk.msra.mxu1 %vm794_vm2, %v644_v33  ;;  %v662_v63 = vpack.c.bf16 %v317_v62, %v316_v61  ;;  %v45_v3 = vpack.c.bf16 %v37_v1, %v36_v0  ;;  %v319_v5 = vld [vmem:[%s1014_s0 + $0x78] sm:$0xff]  ;;  %v687_v8 = vld [vmem:[%s1016_s2 + $0x8] sm:$0xff]   ;;  %v688_v9 = vld [vmem:[%s1016_s2 + $0x10] sm:$0xff]  }
  0x20   :  { %77 = vperm.xlu1 %685, %v59_v45   ;;  %652 = vmatprep.subr.msk.bf16.mxu1 %vm794_vm2, %v650_v44  ;;  %v198_v2 = vsel %vm160_vm0, %v44_v60, 0  ;;  %v668_v6 = vpack.c.bf16 %v319_v5, %v318_v4  ;;  %v303_v10 = vld [vmem:[%s1018_s4 + $0x8] sm:$0xff]  ;;  %v689_v12 = vld [vmem:[%s1016_s2 + $0x18] sm:$0xff]   ;;  %v690_v11 = vld [vmem:[%s1016_s2 + $0x20] sm:$0xff]  }
  0x21   :  { %v201_v7 = vsel %vm160_vm0, %v45_v3, 0  ;;  %v691_v13 = vld [vmem:[%s1016_s2 + $0x28] sm:$0xff]   ;;  %s741_s2 = smov [#allocation2]  }
  0x22   :  { %s492_s4 = sshll.u32 %s741_s2, 4  ;;  %s493_s4 = int_to_ptr.vmem [resolvable:$true] %s492_s4 }
  0x23   :  { %82 = vperm.xlu0 %684, %v60_v48   ;;  %s716_s19 = scalar_lea.vmem %s493_s4, 16  ;;  %s720_s20 = scalar_lea.vmem %s493_s4, 32 }
  0x24   :  { %87 = vperm.xlu1 %685, %v61_v49   ;;  %p717_p0 = scmp.ne.s32.totalorder %s493_s4, %s716_s19  ;;  %p721_p1 = scmp.lt.s32.totalorder %s493_s4, %s493_s4 }
  0x25   :  { %572 = vmatpush3.bf16.xpose.msra.mxu0 %v192_v50  ;;  %p722_p2 = scmp.lt.s32.totalorder %s720_s20, %s716_s19 }
  0x26   :  { %679 = vmatprep.subr.msk.bf16.mxu0 %vm160_vm0, %v43_v51 }
  0x27   :  { %92 = vperm.xlu0 %684, %v62_v54   ;;  %655 = vmatpush3.bf16.xpose.msk.msra.mxu1 %vm794_vm2, %v650_v44  ;;  %p723_p3 = por %p722_p2, %p721_p1 }
  0x28   :  { %97 = vperm.xlu1 %685, %v63_v56   ;;  %658 = vmatprep.subr.msk.bf16.mxu1 %vm794_vm2, %v656_v55 }
  0x29   :  { %p724_p4 = pnand %p723_p3, %p717_p0 }
  0x2d   :  { %574 = vmatpush3.bf16.xpose.msra.mxu0 %v195_v59 }
  0x2e   :  { %680 = vmatprep.subr.msk.bf16.mxu0 %vm160_vm0, %v44_v60 }
  0x2f   :  { %661 = vmatpush3.bf16.xpose.msk.msra.mxu1 %vm794_vm2, %v656_v55 }
  0x30   :  { %664 = vmatprep.subr.msk.bf16.mxu1 %vm794_vm2, %v662_v63 }
  0x35   :  { %576 = vmatpush3.bf16.xpose.msra.mxu0 %v198_v2 }
  0x36   :  { %681 = vmatprep.subr.msk.bf16.mxu0 %vm160_vm0, %v45_v3 }
  0x37   :  { %667 = vmatpush3.bf16.xpose.msk.msra.mxu1 %vm794_vm2, %v662_v63 }
  0x38   :  { %670 = vmatprep.subr.msk.bf16.mxu1 %vm794_vm2, %v668_v6 }
  0x3d   :  { %578 = vmatpush3.bf16.xpose.msra.mxu0 %v201_v7 }
  0x3f   :  { %673 = vmatpush3.bf16.xpose.msk.msra.mxu1 %vm794_vm2, %v668_v6 }
  0x44   :  { %580 = vmatmul.mubr.msk.bf16.vlgmr.msra.gmra.mrb[0].mxu0 %vm160_vm0, %v687_v8 }
  0x45   :  { %583 = vmatprep.mubr.msk.bf16.mxu0 %vm160_vm0, %v688_v9 }
  0x46   :  { %624 = vmatmul.mubr.msk.f32.vlgmr.msra.gmra.mrb[0].mxu1 %vm320_vm1, %v303_v10 }
  0x4c   :  { %584 = vmatmul.mubr.msk.bf16.gmra.mrb[4].mxu0 %vm160_vm0, %v689_v12 }
  0x4d   :  { %587 = vmatprep.mubr.msk.bf16.mxu0 %vm160_vm0, %v690_v11 }
  0x54   :  { %588 = vmatmul.mubr.msk.bf16.gmra.mrb[8].mxu0 %vm160_vm0, %v691_v13 }
  0x87   :  { %v103_v19 = vpop.permute.xlu0 %102 }
  0x88   :  { %v113_v21 = vpop.permute.xlu1 %112 }
  0x96   :  { %v108_v25 = vpop.permute.xlu0 %107 }
  0x97   :  { %v118_v29 = vpop.permute.xlu1 %117 }
  0x9a   :  { %v123_v30 = vpop.permute.xlu0 %122 }
  0x9b   :  { %v128_v34 = vpop.permute.xlu1 %127 }
  0x9e   :  { %v73_v51 = vpop.permute.xlu0 %72 }
  0x9f   :  { %v78_v57 = vpop.permute.xlu1 %77 }
  0xa2   :  { %v83_v3 = vpop.permute.xlu0 %82 }
  0xa3   :  { %v88_v5 = vpop.permute.xlu1 %87 }
  0xa6   :  { %v93_v9 = vpop.permute.xlu0 %92 }
 0x117   :  { %v990_v14 = vpop.f32.mrb[0].mxu0 }
 0x118   :  { %v237_v15 = vpop.f32.mrb[1].mxu0  ;;  %v246_v6 = vadd.f32 %v990_v14, %v83_v3 }
 0x119   :  { %v992_v16 = vpop.f32.mrb[2].mxu0  ;;  %v625_v18 = vpop.f32.mrb[0].mxu1  ;;  %v238_v56 = vadd.f32 %v237_v15, %v73_v51 }
 0x11a   :  { %v240_v17 = vpop.f32.mrb[3].mxu0  ;;  %v441_v20 = vpop.f32.mrb[1].mxu1  ;;  %v249_v10 = vadd.f32 %v992_v16, %v88_v5 }
 0x11b   :  { %v241_v62 = vadd.f32 %v240_v17, %v78_v57  ;;  %v98_v15 = vpop.permute.xlu1 %97 }
 0x11f   :  { %v585_v22 = vpop.f32.mrb[4].mxu0 }
 0x120   :  { %v262_v23 = vadd.f32 %v585_v22, %v103_v19  ;;  %v994_v24 = vpop.f32.mrb[5].mxu0 }
 0x121   :  { %v586_v26 = vpop.f32.mrb[6].mxu0  ;;  %v254_v17 = vadd.f32 %v994_v24, %v93_v9 }
 0x122   :  { %692 = vtanh.f32 %v262_v23  ;;  %v265_v27 = vadd.f32 %v586_v26, %v108_v25  ;;  %v996_v28 = vpop.f32.mrb[7].mxu0 }
 0x124   :  { %694 = vtanh.f32 %v265_v27 }
 0x127   :  { %v589_v31 = vpop.f32.mrb[8].mxu0 }
 0x128   :  { %v278_v32 = vadd.f32 %v589_v31, %v123_v30  ;;  %v269_v33 = vpop.f32.mrb[9].mxu0 }
 0x129   :  { %v270_v35 = vadd.f32 %v269_v33, %v113_v21  ;;  %v590_v36 = vpop.f32.mrb[10].mxu0  ;;  %v257_v21 = vadd.f32 %v996_v28, %v98_v15 }
 0x12a   :  { %696 = vtanh.f32 %v278_v32  ;;  %v281_v37 = vadd.f32 %v590_v36, %v128_v34  ;;  %v272_v38 = vpop.f32.mrb[11].mxu0 }
 0x12b   :  { %698 = vtanh.f32 %v270_v35  ;;  %v273_v39 = vadd.f32 %v272_v38, %v118_v29 }
 0x12c   :  { %v693_v40 = vpop.eup %692  ;;  %700 = vtanh.f32 %v281_v37 }
 0x12d   :  { %702 = vtanh.f32 %v273_v39  ;;  %v290_v41 = vmul.f32 1.442695, %v693_v40 }
 0x12e   :  { %v695_v42 = vpop.eup %694 }
 0x12f   :  { %v462_v43 = vadd.f32 %v695_v42, %v693_v40  ;;  %v292_v44 = vmul.f32 1.442695, %v695_v42  ;;  %704 = vpow2.f32 %v290_v41 }
 0x131   :  { %706 = vpow2.f32 %v292_v44 }
 0x134   :  { %v697_v45 = vpop.eup %696 }
 0x135   :  { %v699_v46 = vpop.eup %698  ;;  %v298_v52 = vmul.f32 1.442695, %v697_v45 }
 0x136   :  { %v701_v47 = vpop.eup %700  ;;  %v294_v48 = vmul.f32 1.442695, %v699_v46  ;;  %v463_v49 = vadd.f32 %v699_v46, %v462_v43 }
 0x137   :  { %v703_v50 = vpop.eup %702  ;;  %v300_v58 = vmul.f32 1.442695, %v701_v47 }
 0x138   :  { %708 = vpow2.f32 %v294_v48  ;;  %v296_v53 = vmul.f32 1.442695, %v703_v50  ;;  %v464_v54 = vadd.f32 %v703_v50, %v463_v49 }
 0x139   :  { %v705_v55 = vpop.eup %704 }
 0x13a   :  { %710 = vpow2.f32 %v296_v53  ;;  %v450_v59 = vmul.f32 %v705_v55, %v441_v20  ;;  %v465_v60 = vadd.f32 %v697_v45, %v464_v54 }
 0x13b   :  { %v707_v61 = vpop.eup %706  ;;  %712 = vpow2.f32 %v298_v52 }
 0x13c   :  { %v451_v63 = vmul.f32 %v707_v61, %v625_v18  ;;  %v452_v0 = vadd.f32 %v450_v59, %v238_v56  ;;  %v466_v1 = vadd.f32 %v701_v47, %v465_v60  ;;  %714 = vpow2.f32 %v300_v58 }
 0x13e   :  { %v453_v2 = vadd.f32 %v451_v63, %v241_v62  ;;  %v467_v14 = vrot.slane %v466_v1, 4 }
 0x140   :  { %v468_v29 = vadd.f32 %v467_v14, %v466_v1 }
 0x142   :  { %v709_v4 = vpop.eup %708  ;;  %v469_v31 = vrot.slane %v468_v29, 2 }
 0x143   :  { %v454_v7 = vmul.f32 %v709_v4, %v452_v0 }
 0x144   :  { %v711_v8 = vpop.eup %710  ;;  %v470_v34 = vadd.f32 %v469_v31, %v468_v29 }
 0x145   :  { %v455_v12 = vmul.f32 %v711_v8, %v453_v2  ;;  %v456_v11 = vadd.f32 %v454_v7, %v246_v6  ;;  %v713_v13 = vpop.eup %712 }
 0x146   :  { %v715_v20 = vpop.eup %714  ;;  %v471_v36 = vrot.slane %v470_v34, 1 }
 0x147   :  { %v457_v18 = vadd.f32 %v455_v12, %v249_v10  ;;  %v458_v19 = vmul.f32 %v713_v13, %v456_v11 }
 0x148   :  { %v472_v28 = vadd.f32 %v471_v36, %v470_v34 }
 0x149   :  { %v459_v22 = vmul.f32 %v715_v20, %v457_v18  ;;  %v460_v23 = vadd.f32 %v458_v19, %v254_v17 }
 0x14b   :  { %v461_v25 = vadd.f32 %v459_v22, %v257_v21  ;;  %v473_v27 = vmul.f32 %v460_v23, %v460_v23 }
 0x14d   :  { %v474_v26 = vmul.f32 %v461_v25, %v461_v25 }
 0x14f   :  { %v475_v30 = vadd.f32 %v474_v26, %v473_v27 }
 0x151   :  { %v476_v16 = vrot.slane %v475_v30, 4 }
 0x153   :  { %v477_v32 = vadd.f32 %v476_v16, %v475_v30 }
 0x155   :  { %v478_v33 = vrot.slane %v477_v32, 2 }
 0x157   :  { %v479_v35 = vadd.f32 %v478_v33, %v477_v32 }
 0x159   :  { %v480_v24 = vrot.slane %v479_v35, 1 }
 0x15b   :  { %v481_v37 = vadd.f32 %v480_v24, %v479_v35 }
 0x15d   :  { %v482_v38 = vmul.f32 -0.5, %v481_v37 }
 0x15f   :  { %v530_v39 = vadd.f32 -14.703016, %v482_v38 }
 0x161   :  { %v484_v40 = vadd.f32 %v530_v39, %v472_v28 }
 0x163   :  { %485 = vst [vmem:[#allocation2] sm:$0x1] %v484_v40 }
 0x164   :  { %727 = shalt.err (!%p724_p4)
}
 0x165   :  { %s728_s3 = scalar_lea.hbm %s1019_s5, 16 }
 0x166   :  { %p729_p5 = scmp.ne.s32.totalorder %s1019_s5, %s728_s3  ;;  %p732_p6 = scmp.lt.u32.totalorder %s728_s3, %s1019_s5 }
 0x168   :  { %p734_p7 = pnand %p732_p6, %p729_p5 }
 0x16a   :  { %737 = shalt.err (!%p734_p7)
}
 0x16b   :  { %495 = dma.vmem_to_hbm [thread:$0]  %s493_s4, 16, %s1019_s5, [#allocation3]  }
 0x16c   :  { %738 = dma.done.wait [#allocation3], 16  }
 0x16d   :  { %739 = vsyncadd [#allocation3], 4294967280 }
 0x16e   :  { %499 = vsyncpa [#allocation3], 1 }

</bundles_post_ra>
